<compile_context>
chip_gen: v6e
topology: v6e:2x2x1
jax: 0.10.0
libtpu: 0.0.40
codegen_flags: <defaults>
</compile_context>

<pallas_src>
import functools

import jax
import jax.numpy as jnp
import numpy as np
from jax import lax
from jax.experimental import pallas as pl
from jax.experimental.pallas import tpu as pltpu

SMOOTH = 1e-05
LANE = 128
SUBLANE = 8
_TARGET_TILE_BYTES = 6 * 1024 * 1024  # score bytes per grid step


def _fold8(x):
    """(rows, 128) -> (8, 128) by summing aligned 8-row groups (VALU-only)."""
    rows = x.shape[0]
    acc = x[0:SUBLANE, :]
    for g in range(1, rows // SUBLANE):
        acc = acc + x[g * SUBLANE:(g + 1) * SUBLANE, :]
    return acc


def _dice_partials_kernel(score_ref, label_ref, out_ref, *,
                          n_classes, s_rows, sub, chunk, softmax,
                          has_pad, has_partial_tile):
    """One grid step == one (batch element, spatial row-tile).

    score_ref : VMEM (1, C, sub, 128)   scores (f32/bf16) for this tile
    label_ref : VMEM (1, 1, sub, 128)   int32 labels (-1 marks padding)
    out_ref   : VMEM (1, 3, C, 8, 128)  f32 per-batch resident accumulator:
                row 0: sum(score * onehot)   (intersect partials)
                row 1: sum(onehot)           (y_sum partials; onehot^2 == onehot)
                row 2: sum(score * score)    (z_sum partials)
    """
    st = pl.program_id(1)

    @pl.when(st == 0)
    def _init():
        out_ref[...] = jnp.zeros_like(out_ref)

    num_full = sub // chunk
    rem = sub - num_full * chunk          # multiple of 8 by construction
    zero = jnp.zeros((SUBLANE, LANE), jnp.float32)

    def process(carry, off, rows, masked):
        inter, ysum, zsum = carry
        labels = label_ref[0, 0, pl.ds(off, rows), :]
        if masked:
            # Ragged last tile: rows past the array end hold stale data; kill them.
            gid = lax.broadcasted_iota(jnp.int32, (rows, LANE), 0) + (st * sub + off)
            rvalid = gid < s_rows
            labels = jnp.where(rvalid, labels, -1)

        if softmax:
            chans = [score_ref[0, c, pl.ds(off, rows), :].astype(jnp.float32)
                     for c in range(n_classes)]
            if masked:
                chans = [jnp.where(rvalid, x, 0.0) for x in chans]
            m = chans[0]
            for c in range(1, n_classes):
                m = jnp.maximum(m, chans[c])
            chans = [jnp.exp(x - m) for x in chans]       # overwrite: low liveness
            denom = chans[0]
            for c in range(1, n_classes):
                denom = denom + chans[c]
            inv = pl.reciprocal(denom, approx=True)       # EUP, off the VALU slot
            inv = inv * (2.0 - denom * inv)               # one Newton step
            if has_pad or masked:
                inv = jnp.where(labels >= 0, inv, 0.0)    # single mask, not per class
            chans = [e * inv for e in chans]

        new_i, new_y, new_z = [], [], []
        for c in range(n_classes):                        # static unroll, C small
            if softmax:
                sc = chans[c]
            else:
                # load inside the class loop (liveness); no mask on full tiles
                sc = score_ref[0, c, pl.ds(off, rows), :].astype(jnp.float32)
                if masked:
                    sc = jnp.where(rvalid, sc, 0.0)
            onehot = labels == c
            new_i.append(inter[c] + _fold8(jnp.where(onehot, sc, 0.0)))
            new_y.append(ysum[c] + _fold8(onehot.astype(jnp.float32)))
            new_z.append(zsum[c] + _fold8(sc * sc))
        return tuple(new_i), tuple(new_y), tuple(new_z)

    def run_tile(masked):
        init = (tuple(zero for _ in range(n_classes)),
                tuple(zero for _ in range(n_classes)),
                tuple(zero for _ in range(n_classes)))

        def chunk_body(j, carry):
            off = pl.multiple_of(j * chunk, chunk)
            return process(carry, off, chunk, masked)

        carry = lax.fori_loop(0, num_full, chunk_body, init,
                              unroll=2 if num_full >= 2 else 1)
        if rem:
            carry = process(carry, num_full * chunk, rem, masked)

        inter, ysum, zsum = carry
        for c in range(n_classes):                        # once per TILE, not per chunk
            out_ref[0, 0, c] += inter[c]
            out_ref[0, 1, c] += ysum[c]
            out_ref[0, 2, c] += zsum[c]

    if not has_partial_tile:
        run_tile(masked=False)
    else:
        n_sp = pl.num_programs(1)

        @pl.when(st < n_sp - 1)
        def _full():
            run_tile(masked=False)

        @pl.when(st == n_sp - 1)
        def _tail():
            run_tile(masked=True)


def _choose_tiling(n_classes, s_rows, score_itemsize, tile_rows=None):
    """Pick (chunk rows, rows per spatial tile, last-tile-is-partial)."""
    # Sublane packing granule of the score dtype (f32:8, bf16/f16:16).
    granule = SUBLANE * max(1, 4 // score_itemsize)
    # Keep the unpacked per-chunk channel data around <=16 vregs.
    chunk = (LANE // max(n_classes, 1)) // granule * granule
    chunk = max(granule, min(32, chunk))

    if tile_rows is not None:                 # testing hook
        sub = int(tile_rows)
        assert sub > 0 and sub % SUBLANE == 0
        return min(chunk, sub), sub, (s_rows % sub) != 0

    row_bytes = n_classes * LANE * score_itemsize
    max_rows = max(chunk, (_TARGET_TILE_BYTES // row_bytes) // chunk * chunk)

    if s_rows <= max_rows:                    # single spatial tile, no raggedness
        return min(chunk, s_rows), s_rows, False

    # Prefer a tile size that divides the row count exactly (no ragged tail).
    cand = max_rows
    while cand >= chunk and cand * 4 >= max_rows:
        if s_rows % cand == 0:
            return chunk, cand, False
        cand -= chunk

    # Fallback: ragged last tile, masked in-kernel (no wrapper pad).
    return chunk, max_rows, (s_rows % max_rows) != 0


@functools.partial(jax.jit, static_argnames=("n_classes", "softmax", "tile_rows"))
def dice_loss(inputs, target, weight=None, *, n_classes, softmax=False,
              tile_rows=None):
    """Pallas implementation of DiceLoss.forward.

    inputs : (N, C, H, W) scores (f32 or bf16/f16)
    target : (N, 1, H, W) integer class labels in [0, n_classes)
    weight : optional (C,) class weights (default: all ones)
    returns: scalar float32 loss
    """
    N, C, H, W = inputs.shape
    assert C == n_classes
    if target.ndim == 3:
        target = target[:, None]
    assert target.shape == (N, 1, H, W)

    if weight is None:
        weight = jnp.ones((n_classes,), jnp.float32)
    else:
        weight = jnp.asarray(weight, jnp.float32)

    # Keep 16-bit scores in their storage dtype (halves input DMA); upcast
    # happens per-chunk inside the kernel.
    if inputs.dtype not in (jnp.float32, jnp.bfloat16, jnp.float16):
        inputs = inputs.astype(jnp.float32)
    score_itemsize = inputs.dtype.itemsize

    hw = H * W
    s_true = pl.cdiv(hw, LANE)
    s_rows = pl.cdiv(s_true, SUBLANE) * SUBLANE     # rows of 128 lanes, multiple of 8
    hw_pad = s_rows * LANE

    scores = inputs.reshape(N, C, hw)               # free reshapes (row-major)
    labels = target.astype(jnp.int32).reshape(N, 1, hw)
    has_pad = hw_pad != hw
    if has_pad:
        # Only when H*W is not a multiple of 1024 (<=1023 elements of tail pad).
        # TODO(synk): int8 labels (with a pad sentinel + 32-row-aligned tiles) would
        # cut label HBM traffic another 4x on this memory-bound kernel.
        scores = jnp.pad(scores, ((0, 0), (0, 0), (0, hw_pad - hw)))
        labels = jnp.pad(labels, ((0, 0), (0, 0), (0, hw_pad - hw)),
                         constant_values=-1)
    scores = scores.reshape(N, C, s_rows, LANE)
    labels = labels.reshape(N, 1, s_rows, LANE)

    chunk, sub, has_partial_tile = _choose_tiling(n_classes, s_rows,
                                                  score_itemsize, tile_rows)
    s_tiles = pl.cdiv(s_rows, sub)

    kernel = functools.partial(
        _dice_partials_kernel, n_classes=n_classes, s_rows=s_rows, sub=sub,
        chunk=chunk, softmax=softmax, has_pad=has_pad,
        has_partial_tile=has_partial_tile)

    # Double-buffered working set -> explicit VMEM limit (v5e's default is 16 MiB).
    score_block = n_classes * sub * LANE * score_itemsize
    label_block = sub * LANE * 4
    out_block = 3 * n_classes * SUBLANE * LANE * 4
    vmem_limit = int(min(max(2 * (score_block + label_block + out_block) + (8 << 20),
                             32 << 20), 48 << 20))

    elems = N * n_classes * s_rows * LANE
    cost = pl.CostEstimate(
        flops=9 * elems + (6 * elems if softmax else 0),
        transcendentals=elems if softmax else 0,
        bytes_accessed=score_itemsize * elems + 4 * N * s_rows * LANE
        + 4 * N * 3 * n_classes * SUBLANE * LANE)

    partials = pl.pallas_call(
        kernel,
        out_shape=jax.ShapeDtypeStruct((N, 3, n_classes, SUBLANE, LANE),
                                       jnp.float32),
        grid=(N, s_tiles),
        in_specs=[
            pl.BlockSpec((1, n_classes, sub, LANE), lambda n, st: (n, 0, st, 0)),
            pl.BlockSpec((1, 1, sub, LANE), lambda n, st: (n, 0, st, 0)),
        ],
        out_specs=pl.BlockSpec((1, 3, n_classes, SUBLANE, LANE),
                               lambda n, st: (n, 0, 0, 0, 0)),
        compiler_params=pltpu.CompilerParams(
            dimension_semantics=("parallel", "arbitrary"),
            vmem_limit_bytes=vmem_limit),
        cost_estimate=cost,
    )(scores, labels)

    # O(C) finalize in XLA: cross-batch/lane reduce, dice formula, weights, /C.
    sums = jnp.sum(partials, axis=(0, 3, 4))          # (3, C)
    intersect, y_sum, z_sum = sums[0], sums[1], sums[2]
    dice = 1.0 - (2.0 * intersect + SMOOTH) / (z_sum + y_sum + SMOOTH)
    return jnp.sum(dice * weight) / n_classes


def _dice_loss_reference(inputs, target, weight=None, *, n_classes, softmax=False):
    """Pure-numpy re-implementation of the PyTorch module for checking."""
    inputs = np.asarray(inputs, dtype=np.float64)
    target = np.asarray(target)
    if softmax:
        e = np.exp(inputs - inputs.max(axis=1, keepdims=True))
        inputs = e / e.sum(axis=1, keepdims=True)
    if weight is None:
        weight = [1.0] * n_classes
    loss = 0.0
    for i in range(n_classes):
        score = inputs[:, i]
        one_hot = (target[:, 0] == i).astype(np.float64)
        intersect = np.sum(score * one_hot)
        y_sum = np.sum(one_hot * one_hot)
        z_sum = np.sum(score * score)
        dice = 1.0 - (2.0 * intersect + SMOOTH) / (z_sum + y_sum + SMOOTH)
        loss += dice * float(np.asarray(weight)[i])
    return np.float64(loss / n_classes)


if __name__ == "__main__":
    key = jax.random.PRNGKey(0)
    k1, k2, k3, k4 = jax.random.split(key, 4)

    N, C, H, W = 2, 4, 16, 16
    inputs = jax.random.normal(k1, (N, C, H, W), dtype=jnp.float32)
    target = jax.random.randint(k2, (N, 1, H, W), 0, C, dtype=jnp.int32)

    # softmax=True (typical training usage), default weights.
    out_sm = jax.block_until_ready(dice_loss(inputs, target, n_classes=C, softmax=True))
    ref_sm = _dice_loss_reference(inputs, target, n_classes=C, softmax=True)
    assert np.allclose(np.asarray(out_sm), ref_sm, rtol=1e-4, atol=1e-4), (out_sm, ref_sm)

    # softmax=False (module default), explicit class weights.
    w = jnp.array([1.0, 0.5, 2.0, 1.5], dtype=jnp.float32)
    out_raw = jax.block_until_ready(dice_loss(inputs, target, w, n_classes=C, softmax=False))
    ref_raw = _dice_loss_reference(inputs, target, np.asarray(w), n_classes=C, softmax=False)
    assert np.allclose(np.asarray(out_raw), ref_raw, rtol=1e-5, atol=1e-5), (out_raw, ref_raw)

    # Multi-tile spatial grid (forced small tile): exercises per-batch resident
    # accumulation across spatial tiles and the "parallel" batch axis.
    H2 = W2 = 64                                      # H*W = 4096 -> 32 rows of 128
    inputs2 = jax.random.normal(k3, (N, C, H2, W2), dtype=jnp.float32)
    target2 = jax.random.randint(k4, (N, 1, H2, W2), 0, C, dtype=jnp.int32)
    out2 = jax.block_until_ready(
        dice_loss(inputs2, target2, n_classes=C, softmax=True, tile_rows=16))
    ref2 = _dice_loss_reference(inputs2, target2, n_classes=C, softmax=True)
    assert np.allclose(np.asarray(out2), ref2, rtol=1e-4, atol=1e-4), (out2, ref2)

    print("KERNEL_OK")
</pallas_src>

<mosaic_0001>
module attributes {stable_mosaic.version = 11 : i64} {
  func.func @_dice_partials_kernel(%arg0: i32, %arg1: i32, %arg2: memref<1x4x8x128xf32, #tpu.memory_space<vmem>>, %arg3: memref<1x1x8x128xi32, #tpu.memory_space<vmem>>, %arg4: memref<1x3x4x8x128xf32, #tpu.memory_space<vmem>>) attributes {dimension_semantics = [#tpu.dimension_semantics<parallel>, #tpu.dimension_semantics<arbitrary>], iteration_bounds = array<i64: 2, 1>, scalar_prefetch = 0 : i64, scratch_operands = 0 : i64, tpu.core_type = #tpu.core_type<tc>, window_params = [{transform_indices = @transform_0, window_bounds = array<i64: 1, 4, 8, 128>}, {transform_indices = @transform_1, window_bounds = array<i64: 1, 1, 8, 128>}, {transform_indices = @transform_2, window_bounds = array<i64: 1, 3, 4, 8, 128>}]} {
    %c0_i32 = arith.constant 0 : i32
    %0 = arith.cmpi eq, %arg1, %c0_i32 : i32
    %1 = arith.extui %0 : i1 to i32
    %c0_i32_0 = arith.constant 0 : i32
    %2 = arith.cmpi ne, %1, %c0_i32_0 : i32
    scf.if %2 {
      %cst_142 = arith.constant 0.000000e+00 : f32
      %160 = vector.broadcast %cst_142 : f32 to vector<1x3x4x8x128xf32>
      %c0_143 = arith.constant 0 : index
      %c0_144 = arith.constant 0 : index
      %c0_145 = arith.constant 0 : index
      %c0_146 = arith.constant 0 : index
      %c0_147 = arith.constant 0 : index
      %161 = vector.load %arg4[%c0_143, %c0_144, %c0_145, %c0_146, %c0_147] : memref<1x3x4x8x128xf32, #tpu.memory_space<vmem>>, vector<1x3x4x8x128xf32>
      tpu.vector_store %arg4[%c0_143, %c0_144, %c0_145, %c0_146, %c0_147], %160 {strides = array<i32>} : memref<1x3x4x8x128xf32, #tpu.memory_space<vmem>>, vector<1x3x4x8x128xf32>,
    } else {
    }
    %cst = arith.constant 0.000000e+00 : f32
    %3 = vector.broadcast %cst : f32 to vector<8x128xf32>
    %c0_i32_1 = arith.constant 0 : i32
    %c8_i32 = arith.constant 8 : i32
    %4 = arith.muli %c0_i32_1, %c8_i32 : i32
    %5 = tpu.assume_multiple %4, 8 : i32
    %c0 = arith.constant 0 : index
    %c0_2 = arith.constant 0 : index
    %6 = arith.index_cast %5 : i32 to index
    %c0_3 = arith.constant 0 : index
    %7 = vector.load %arg3[%c0, %c0_2, %6, %c0_3] : memref<1x1x8x128xi32, #tpu.memory_space<vmem>>, vector<1x1x8x128xi32>
    %8 = vector.shape_cast %7 : vector<1x1x8x128xi32> to vector<8x128xi32>
    %c0_4 = arith.constant 0 : index
    %c0_5 = arith.constant 0 : index
    %9 = arith.index_cast %5 : i32 to index
    %c0_6 = arith.constant 0 : index
    %10 = vector.load %arg2[%c0_4, %c0_5, %9, %c0_6] : memref<1x4x8x128xf32, #tpu.memory_space<vmem>>, vector<1x1x8x128xf32>
    %11 = vector.shape_cast %10 : vector<1x1x8x128xf32> to vector<8x128xf32>
    %c0_7 = arith.constant 0 : index
    %c1 = arith.constant 1 : index
    %12 = arith.index_cast %5 : i32 to index
    %c0_8 = arith.constant 0 : index
    %13 = vector.load %arg2[%c0_7, %c1, %12, %c0_8] : memref<1x4x8x128xf32, #tpu.memory_space<vmem>>, vector<1x1x8x128xf32>
    %14 = vector.shape_cast %13 : vector<1x1x8x128xf32> to vector<8x128xf32>
    %c0_9 = arith.constant 0 : index
    %c2 = arith.constant 2 : index
    %15 = arith.index_cast %5 : i32 to index
    %c0_10 = arith.constant 0 : index
    %16 = vector.load %arg2[%c0_9, %c2, %15, %c0_10] : memref<1x4x8x128xf32, #tpu.memory_space<vmem>>, vector<1x1x8x128xf32>
    %17 = vector.shape_cast %16 : vector<1x1x8x128xf32> to vector<8x128xf32>
    %c0_11 = arith.constant 0 : index
    %c3 = arith.constant 3 : index
    %18 = arith.index_cast %5 : i32 to index
    %c0_12 = arith.constant 0 : index
    %19 = vector.load %arg2[%c0_11, %c3, %18, %c0_12] : memref<1x4x8x128xf32, #tpu.memory_space<vmem>>, vector<1x1x8x128xf32>
    %20 = vector.shape_cast %19 : vector<1x1x8x128xf32> to vector<8x128xf32>
    %21 = arith.maximumf %11, %14 : vector<8x128xf32>
    %22 = arith.maximumf %21, %17 : vector<8x128xf32>
    %23 = arith.maximumf %22, %20 : vector<8x128xf32>
    %24 = arith.subf %11, %23 : vector<8x128xf32>
    %25 = math.exp %24 : vector<8x128xf32>
    %26 = arith.subf %14, %23 : vector<8x128xf32>
    %27 = math.exp %26 : vector<8x128xf32>
    %28 = arith.subf %17, %23 : vector<8x128xf32>
    %29 = math.exp %28 : vector<8x128xf32>
    %30 = arith.subf %20, %23 : vector<8x128xf32>
    %31 = math.exp %30 : vector<8x128xf32>
    %32 = arith.addf %25, %27 : vector<8x128xf32>
    %33 = arith.addf %32, %29 : vector<8x128xf32>
    %34 = arith.addf %33, %31 : vector<8x128xf32>
    %35 = tpu.reciprocal %34 {approx = true} : vector<8x128xf32> -> vector<8x128xf32>
    %36 = arith.mulf %34, %35 : vector<8x128xf32>
    %cst_13 = arith.constant 2.000000e+00 : f32
    %37 = vector.broadcast %cst_13 : f32 to vector<8x128xf32>
    %38 = arith.subf %37, %36 : vector<8x128xf32>
    %39 = arith.mulf %35, %38 : vector<8x128xf32>
    %c0_i32_14 = arith.constant 0 : i32
    %40 = vector.broadcast %c0_i32_14 : i32 to vector<8x128xi32>
    %41 = arith.cmpi sge, %8, %40 : vector<8x128xi32>
    %cst_15 = arith.constant 0.000000e+00 : f32
    %42 = vector.broadcast %cst_15 : f32 to vector<8x128xf32>
    %43 = arith.select %41, %39, %42 : vector<8x128xi1>, vector<8x128xf32>
    %44 = arith.mulf %25, %43 : vector<8x128xf32>
    %45 = arith.mulf %27, %43 : vector<8x128xf32>
    %46 = arith.mulf %29, %43 : vector<8x128xf32>
    %47 = arith.mulf %31, %43 : vector<8x128xf32>
    %c0_i32_16 = arith.constant 0 : i32
    %48 = vector.broadcast %c0_i32_16 : i32 to vector<8x128xi32>
    %49 = arith.cmpi eq, %8, %48 : vector<8x128xi32>
    %cst_17 = arith.constant 0.000000e+00 : f32
    %50 = vector.broadcast %cst_17 : f32 to vector<8x128xf32>
    %51 = arith.select %49, %44, %50 : vector<8x128xi1>, vector<8x128xf32>
    %52 = arith.addf %3, %51 : vector<8x128xf32>
    %53 = arith.extui %49 : vector<8x128xi1> to vector<8x128xi32>
    %54 = arith.sitofp %53 : vector<8x128xi32> to vector<8x128xf32>
    %55 = arith.addf %3, %54 : vector<8x128xf32>
    %56 = arith.mulf %44, %44 : vector<8x128xf32>
    %57 = arith.addf %3, %56 : vector<8x128xf32>
    %c1_i32 = arith.constant 1 : i32
    %58 = vector.broadcast %c1_i32 : i32 to vector<8x128xi32>
    %59 = arith.cmpi eq, %8, %58 : vector<8x128xi32>
    %cst_18 = arith.constant 0.000000e+00 : f32
    %60 = vector.broadcast %cst_18 : f32 to vector<8x128xf32>
    %61 = arith.select %59, %45, %60 : vector<8x128xi1>, vector<8x128xf32>
    %62 = arith.addf %3, %61 : vector<8x128xf32>
    %63 = arith.extui %59 : vector<8x128xi1> to vector<8x128xi32>
    %64 = arith.sitofp %63 : vector<8x128xi32> to vector<8x128xf32>
    %65 = arith.addf %3, %64 : vector<8x128xf32>
    %66 = arith.mulf %45, %45 : vector<8x128xf32>
    %67 = arith.addf %3, %66 : vector<8x128xf32>
    %c2_i32 = arith.constant 2 : i32
    %68 = vector.broadcast %c2_i32 : i32 to vector<8x128xi32>
    %69 = arith.cmpi eq, %8, %68 : vector<8x128xi32>
    %cst_19 = arith.constant 0.000000e+00 : f32
    %70 = vector.broadcast %cst_19 : f32 to vector<8x128xf32>
    %71 = arith.select %69, %46, %70 : vector<8x128xi1>, vector<8x128xf32>
    %72 = arith.addf %3, %71 : vector<8x128xf32>
    %73 = arith.extui %69 : vector<8x128xi1> to vector<8x128xi32>
    %74 = arith.sitofp %73 : vector<8x128xi32> to vector<8x128xf32>
    %75 = arith.addf %3, %74 : vector<8x128xf32>
    %76 = arith.mulf %46, %46 : vector<8x128xf32>
    %77 = arith.addf %3, %76 : vector<8x128xf32>
    %c3_i32 = arith.constant 3 : i32
    %78 = vector.broadcast %c3_i32 : i32 to vector<8x128xi32>
    %79 = arith.cmpi eq, %8, %78 : vector<8x128xi32>
    %cst_20 = arith.constant 0.000000e+00 : f32
    %80 = vector.broadcast %cst_20 : f32 to vector<8x128xf32>
    %81 = arith.select %79, %47, %80 : vector<8x128xi1>, vector<8x128xf32>
    %82 = arith.addf %3, %81 : vector<8x128xf32>
    %83 = arith.extui %79 : vector<8x128xi1> to vector<8x128xi32>
    %84 = arith.sitofp %83 : vector<8x128xi32> to vector<8x128xf32>
    %85 = arith.addf %3, %84 : vector<8x128xf32>
    %86 = arith.mulf %47, %47 : vector<8x128xf32>
    %87 = arith.addf %3, %86 : vector<8x128xf32>
    %c1_i32_21 = arith.constant 1 : i32
    %c0_22 = arith.constant 0 : index
    %c0_23 = arith.constant 0 : index
    %c0_24 = arith.constant 0 : index
    %c0_25 = arith.constant 0 : index
    %c0_26 = arith.constant 0 : index
    %88 = vector.load %arg4[%c0_22, %c0_23, %c0_24, %c0_25, %c0_26] : memref<1x3x4x8x128xf32, #tpu.memory_space<vmem>>, vector<1x1x1x8x128xf32>
    %89 = vector.shape_cast %88 : vector<1x1x1x8x128xf32> to vector<8x128xf32>
    %90 = arith.addf %89, %52 : vector<8x128xf32>
    %c0_27 = arith.constant 0 : index
    %c0_28 = arith.constant 0 : index
    %c0_29 = arith.constant 0 : index
    %c0_30 = arith.constant 0 : index
    %c0_31 = arith.constant 0 : index
    %91 = vector.load %arg4[%c0_27, %c0_28, %c0_29, %c0_30, %c0_31] : memref<1x3x4x8x128xf32, #tpu.memory_space<vmem>>, vector<1x1x1x8x128xf32>
    %92 = vector.shape_cast %91 : vector<1x1x1x8x128xf32> to vector<8x128xf32>
    %93 = vector.shape_cast %90 : vector<8x128xf32> to vector<1x1x1x8x128xf32>
    tpu.vector_store %arg4[%c0_27, %c0_28, %c0_29, %c0_30, %c0_31], %93 {strides = array<i32>} : memref<1x3x4x8x128xf32, #tpu.memory_space<vmem>>, vector<1x1x1x8x128xf32>,
    %c0_32 = arith.constant 0 : index
    %c1_33 = arith.constant 1 : index
    %c0_34 = arith.constant 0 : index
    %c0_35 = arith.constant 0 : index
    %c0_36 = arith.constant 0 : index
    %94 = vector.load %arg4[%c0_32, %c1_33, %c0_34, %c0_35, %c0_36] : memref<1x3x4x8x128xf32, #tpu.memory_space<vmem>>, vector<1x1x1x8x128xf32>
    %95 = vector.shape_cast %94 : vector<1x1x1x8x128xf32> to vector<8x128xf32>
    %96 = arith.addf %95, %55 : vector<8x128xf32>
    %c0_37 = arith.constant 0 : index
    %c1_38 = arith.constant 1 : index
    %c0_39 = arith.constant 0 : index
    %c0_40 = arith.constant 0 : index
    %c0_41 = arith.constant 0 : index
    %97 = vector.load %arg4[%c0_37, %c1_38, %c0_39, %c0_40, %c0_41] : memref<1x3x4x8x128xf32, #tpu.memory_space<vmem>>, vector<1x1x1x8x128xf32>
    %98 = vector.shape_cast %97 : vector<1x1x1x8x128xf32> to vector<8x128xf32>
    %99 = vector.shape_cast %96 : vector<8x128xf32> to vector<1x1x1x8x128xf32>
    tpu.vector_store %arg4[%c0_37, %c1_38, %c0_39, %c0_40, %c0_41], %99 {strides = array<i32>} : memref<1x3x4x8x128xf32, #tpu.memory_space<vmem>>, vector<1x1x1x8x128xf32>,
    %c0_42 = arith.constant 0 : index
    %c2_43 = arith.constant 2 : index
    %c0_44 = arith.constant 0 : index
    %c0_45 = arith.constant 0 : index
    %c0_46 = arith.constant 0 : index
    %100 = vector.load %arg4[%c0_42, %c2_43, %c0_44, %c0_45, %c0_46] : memref<1x3x4x8x128xf32, #tpu.memory_space<vmem>>, vector<1x1x1x8x128xf32>
    %101 = vector.shape_cast %100 : vector<1x1x1x8x128xf32> to vector<8x128xf32>
    %102 = arith.addf %101, %57 : vector<8x128xf32>
    %c0_47 = arith.constant 0 : index
    %c2_48 = arith.constant 2 : index
    %c0_49 = arith.constant 0 : index
    %c0_50 = arith.constant 0 : index
    %c0_51 = arith.constant 0 : index
    %103 = vector.load %arg4[%c0_47, %c2_48, %c0_49, %c0_50, %c0_51] : memref<1x3x4x8x128xf32, #tpu.memory_space<vmem>>, vector<1x1x1x8x128xf32>
    %104 = vector.shape_cast %103 : vector<1x1x1x8x128xf32> to vector<8x128xf32>
    %105 = vector.shape_cast %102 : vector<8x128xf32> to vector<1x1x1x8x128xf32>
    tpu.vector_store %arg4[%c0_47, %c2_48, %c0_49, %c0_50, %c0_51], %105 {strides = array<i32>} : memref<1x3x4x8x128xf32, #tpu.memory_space<vmem>>, vector<1x1x1x8x128xf32>,
    %c0_52 = arith.constant 0 : index
    %c0_53 = arith.constant 0 : index
    %c1_54 = arith.constant 1 : index
    %c0_55 = arith.constant 0 : index
    %c0_56 = arith.constant 0 : index
    %106 = vector.load %arg4[%c0_52, %c0_53, %c1_54, %c0_55, %c0_56] : memref<1x3x4x8x128xf32, #tpu.memory_space<vmem>>, vector<1x1x1x8x128xf32>
    %107 = vector.shape_cast %106 : vector<1x1x1x8x128xf32> to vector<8x128xf32>
    %108 = arith.addf %107, %62 : vector<8x128xf32>
    %c0_57 = arith.constant 0 : index
    %c0_58 = arith.constant 0 : index
    %c1_59 = arith.constant 1 : index
    %c0_60 = arith.constant 0 : index
    %c0_61 = arith.constant 0 : index
    %109 = vector.load %arg4[%c0_57, %c0_58, %c1_59, %c0_60, %c0_61] : memref<1x3x4x8x128xf32, #tpu.memory_space<vmem>>, vector<1x1x1x8x128xf32>
    %110 = vector.shape_cast %109 : vector<1x1x1x8x128xf32> to vector<8x128xf32>
    %111 = vector.shape_cast %108 : vector<8x128xf32> to vector<1x1x1x8x128xf32>
    tpu.vector_store %arg4[%c0_57, %c0_58, %c1_59, %c0_60, %c0_61], %111 {strides = array<i32>} : memref<1x3x4x8x128xf32, #tpu.memory_space<vmem>>, vector<1x1x1x8x128xf32>,
    %c0_62 = arith.constant 0 : index
    %c1_63 = arith.constant 1 : index
    %c1_64 = arith.constant 1 : index
    %c0_65 = arith.constant 0 : index
    %c0_66 = arith.constant 0 : index
    %112 = vector.load %arg4[%c0_62, %c1_63, %c1_64, %c0_65, %c0_66] : memref<1x3x4x8x128xf32, #tpu.memory_space<vmem>>, vector<1x1x1x8x128xf32>
    %113 = vector.shape_cast %112 : vector<1x1x1x8x128xf32> to vector<8x128xf32>
    %114 = arith.addf %113, %65 : vector<8x128xf32>
    %c0_67 = arith.constant 0 : index
    %c1_68 = arith.constant 1 : index
    %c1_69 = arith.constant 1 : index
    %c0_70 = arith.constant 0 : index
    %c0_71 = arith.constant 0 : index
    %115 = vector.load %arg4[%c0_67, %c1_68, %c1_69, %c0_70, %c0_71] : memref<1x3x4x8x128xf32, #tpu.memory_space<vmem>>, vector<1x1x1x8x128xf32>
    %116 = vector.shape_cast %115 : vector<1x1x1x8x128xf32> to vector<8x128xf32>
    %117 = vector.shape_cast %114 : vector<8x128xf32> to vector<1x1x1x8x128xf32>
    tpu.vector_store %arg4[%c0_67, %c1_68, %c1_69, %c0_70, %c0_71], %117 {strides = array<i32>} : memref<1x3x4x8x128xf32, #tpu.memory_space<vmem>>, vector<1x1x1x8x128xf32>,
    %c0_72 = arith.constant 0 : index
    %c2_73 = arith.constant 2 : index
    %c1_74 = arith.constant 1 : index
    %c0_75 = arith.constant 0 : index
    %c0_76 = arith.constant 0 : index
    %118 = vector.load %arg4[%c0_72, %c2_73, %c1_74, %c0_75, %c0_76] : memref<1x3x4x8x128xf32, #tpu.memory_space<vmem>>, vector<1x1x1x8x128xf32>
    %119 = vector.shape_cast %118 : vector<1x1x1x8x128xf32> to vector<8x128xf32>
    %120 = arith.addf %119, %67 : vector<8x128xf32>
    %c0_77 = arith.constant 0 : index
    %c2_78 = arith.constant 2 : index
    %c1_79 = arith.constant 1 : index
    %c0_80 = arith.constant 0 : index
    %c0_81 = arith.constant 0 : index
    %121 = vector.load %arg4[%c0_77, %c2_78, %c1_79, %c0_80, %c0_81] : memref<1x3x4x8x128xf32, #tpu.memory_space<vmem>>, vector<1x1x1x8x128xf32>
    %122 = vector.shape_cast %121 : vector<1x1x1x8x128xf32> to vector<8x128xf32>
    %123 = vector.shape_cast %120 : vector<8x128xf32> to vector<1x1x1x8x128xf32>
    tpu.vector_store %arg4[%c0_77, %c2_78, %c1_79, %c0_80, %c0_81], %123 {strides = array<i32>} : memref<1x3x4x8x128xf32, #tpu.memory_space<vmem>>, vector<1x1x1x8x128xf32>,
    %c0_82 = arith.constant 0 : index
    %c0_83 = arith.constant 0 : index
    %c2_84 = arith.constant 2 : index
    %c0_85 = arith.constant 0 : index
    %c0_86 = arith.constant 0 : index
    %124 = vector.load %arg4[%c0_82, %c0_83, %c2_84, %c0_85, %c0_86] : memref<1x3x4x8x128xf32, #tpu.memory_space<vmem>>, vector<1x1x1x8x128xf32>
    %125 = vector.shape_cast %124 : vector<1x1x1x8x128xf32> to vector<8x128xf32>
    %126 = arith.addf %125, %72 : vector<8x128xf32>
    %c0_87 = arith.constant 0 : index
    %c0_88 = arith.constant 0 : index
    %c2_89 = arith.constant 2 : index
    %c0_90 = arith.constant 0 : index
    %c0_91 = arith.constant 0 : index
    %127 = vector.load %arg4[%c0_87, %c0_88, %c2_89, %c0_90, %c0_91] : memref<1x3x4x8x128xf32, #tpu.memory_space<vmem>>, vector<1x1x1x8x128xf32>
    %128 = vector.shape_cast %127 : vector<1x1x1x8x128xf32> to vector<8x128xf32>
    %129 = vector.shape_cast %126 : vector<8x128xf32> to vector<1x1x1x8x128xf32>
    tpu.vector_store %arg4[%c0_87, %c0_88, %c2_89, %c0_90, %c0_91], %129 {strides = array<i32>} : memref<1x3x4x8x128xf32, #tpu.memory_space<vmem>>, vector<1x1x1x8x128xf32>,
    %c0_92 = arith.constant 0 : index
    %c1_93 = arith.constant 1 : index
    %c2_94 = arith.constant 2 : index
    %c0_95 = arith.constant 0 : index
    %c0_96 = arith.constant 0 : index
    %130 = vector.load %arg4[%c0_92, %c1_93, %c2_94, %c0_95, %c0_96] : memref<1x3x4x8x128xf32, #tpu.memory_space<vmem>>, vector<1x1x1x8x128xf32>
    %131 = vector.shape_cast %130 : vector<1x1x1x8x128xf32> to vector<8x128xf32>
    %132 = arith.addf %131, %75 : vector<8x128xf32>
    %c0_97 = arith.constant 0 : index
    %c1_98 = arith.constant 1 : index
    %c2_99 = arith.constant 2 : index
    %c0_100 = arith.constant 0 : index
    %c0_101 = arith.constant 0 : index
    %133 = vector.load %arg4[%c0_97, %c1_98, %c2_99, %c0_100, %c0_101] : memref<1x3x4x8x128xf32, #tpu.memory_space<vmem>>, vector<1x1x1x8x128xf32>
    %134 = vector.shape_cast %133 : vector<1x1x1x8x128xf32> to vector<8x128xf32>
    %135 = vector.shape_cast %132 : vector<8x128xf32> to vector<1x1x1x8x128xf32>
    tpu.vector_store %arg4[%c0_97, %c1_98, %c2_99, %c0_100, %c0_101], %135 {strides = array<i32>} : memref<1x3x4x8x128xf32, #tpu.memory_space<vmem>>, vector<1x1x1x8x128xf32>,
    %c0_102 = arith.constant 0 : index
    %c2_103 = arith.constant 2 : index
    %c2_104 = arith.constant 2 : index
    %c0_105 = arith.constant 0 : index
    %c0_106 = arith.constant 0 : index
    %136 = vector.load %arg4[%c0_102, %c2_103, %c2_104, %c0_105, %c0_106] : memref<1x3x4x8x128xf32, #tpu.memory_space<vmem>>, vector<1x1x1x8x128xf32>
    %137 = vector.shape_cast %136 : vector<1x1x1x8x128xf32> to vector<8x128xf32>
    %138 = arith.addf %137, %77 : vector<8x128xf32>
    %c0_107 = arith.constant 0 : index
    %c2_108 = arith.constant 2 : index
    %c2_109 = arith.constant 2 : index
    %c0_110 = arith.constant 0 : index
    %c0_111 = arith.constant 0 : index
    %139 = vector.load %arg4[%c0_107, %c2_108, %c2_109, %c0_110, %c0_111] : memref<1x3x4x8x128xf32, #tpu.memory_space<vmem>>, vector<1x1x1x8x128xf32>
    %140 = vector.shape_cast %139 : vector<1x1x1x8x128xf32> to vector<8x128xf32>
    %141 = vector.shape_cast %138 : vector<8x128xf32> to vector<1x1x1x8x128xf32>
    tpu.vector_store %arg4[%c0_107, %c2_108, %c2_109, %c0_110, %c0_111], %141 {strides = array<i32>} : memref<1x3x4x8x128xf32, #tpu.memory_space<vmem>>, vector<1x1x1x8x128xf32>,
    %c0_112 = arith.constant 0 : index
    %c0_113 = arith.constant 0 : index
    %c3_114 = arith.constant 3 : index
    %c0_115 = arith.constant 0 : index
    %c0_116 = arith.constant 0 : index
    %142 = vector.load %arg4[%c0_112, %c0_113, %c3_114, %c0_115, %c0_116] : memref<1x3x4x8x128xf32, #tpu.memory_space<vmem>>, vector<1x1x1x8x128xf32>
    %143 = vector.shape_cast %142 : vector<1x1x1x8x128xf32> to vector<8x128xf32>
    %144 = arith.addf %143, %82 : vector<8x128xf32>
    %c0_117 = arith.constant 0 : index
    %c0_118 = arith.constant 0 : index
    %c3_119 = arith.constant 3 : index
    %c0_120 = arith.constant 0 : index
    %c0_121 = arith.constant 0 : index
    %145 = vector.load %arg4[%c0_117, %c0_118, %c3_119, %c0_120, %c0_121] : memref<1x3x4x8x128xf32, #tpu.memory_space<vmem>>, vector<1x1x1x8x128xf32>
    %146 = vector.shape_cast %145 : vector<1x1x1x8x128xf32> to vector<8x128xf32>
    %147 = vector.shape_cast %144 : vector<8x128xf32> to vector<1x1x1x8x128xf32>
    tpu.vector_store %arg4[%c0_117, %c0_118, %c3_119, %c0_120, %c0_121], %147 {strides = array<i32>} : memref<1x3x4x8x128xf32, #tpu.memory_space<vmem>>, vector<1x1x1x8x128xf32>,
    %c0_122 = arith.constant 0 : index
    %c1_123 = arith.constant 1 : index
    %c3_124 = arith.constant 3 : index
    %c0_125 = arith.constant 0 : index
    %c0_126 = arith.constant 0 : index
    %148 = vector.load %arg4[%c0_122, %c1_123, %c3_124, %c0_125, %c0_126] : memref<1x3x4x8x128xf32, #tpu.memory_space<vmem>>, vector<1x1x1x8x128xf32>
    %149 = vector.shape_cast %148 : vector<1x1x1x8x128xf32> to vector<8x128xf32>
    %150 = arith.addf %149, %85 : vector<8x128xf32>
    %c0_127 = arith.constant 0 : index
    %c1_128 = arith.constant 1 : index
    %c3_129 = arith.constant 3 : index
    %c0_130 = arith.constant 0 : index
    %c0_131 = arith.constant 0 : index
    %151 = vector.load %arg4[%c0_127, %c1_128, %c3_129, %c0_130, %c0_131] : memref<1x3x4x8x128xf32, #tpu.memory_space<vmem>>, vector<1x1x1x8x128xf32>
    %152 = vector.shape_cast %151 : vector<1x1x1x8x128xf32> to vector<8x128xf32>
    %153 = vector.shape_cast %150 : vector<8x128xf32> to vector<1x1x1x8x128xf32>
    tpu.vector_store %arg4[%c0_127, %c1_128, %c3_129, %c0_130, %c0_131], %153 {strides = array<i32>} : memref<1x3x4x8x128xf32, #tpu.memory_space<vmem>>, vector<1x1x1x8x128xf32>,
    %c0_132 = arith.constant 0 : index
    %c2_133 = arith.constant 2 : index
    %c3_134 = arith.constant 3 : index
    %c0_135 = arith.constant 0 : index
    %c0_136 = arith.constant 0 : index
    %154 = vector.load %arg4[%c0_132, %c2_133, %c3_134, %c0_135, %c0_136] : memref<1x3x4x8x128xf32, #tpu.memory_space<vmem>>, vector<1x1x1x8x128xf32>
    %155 = vector.shape_cast %154 : vector<1x1x1x8x128xf32> to vector<8x128xf32>
    %156 = arith.addf %155, %87 : vector<8x128xf32>
    %c0_137 = arith.constant 0 : index
    %c2_138 = arith.constant 2 : index
    %c3_139 = arith.constant 3 : index
    %c0_140 = arith.constant 0 : index
    %c0_141 = arith.constant 0 : index
    %157 = vector.load %arg4[%c0_137, %c2_138, %c3_139, %c0_140, %c0_141] : memref<1x3x4x8x128xf32, #tpu.memory_space<vmem>>, vector<1x1x1x8x128xf32>
    %158 = vector.shape_cast %157 : vector<1x1x1x8x128xf32> to vector<8x128xf32>
    %159 = vector.shape_cast %156 : vector<8x128xf32> to vector<1x1x1x8x128xf32>
    tpu.vector_store %arg4[%c0_137, %c2_138, %c3_139, %c0_140, %c0_141], %159 {strides = array<i32>} : memref<1x3x4x8x128xf32, #tpu.memory_space<vmem>>, vector<1x1x1x8x128xf32>,
    return
  }
  func.func @transform_0(%arg0: i32, %arg1: i32) -> (i32, i32, i32, i32) {
    %c0_i32 = arith.constant 0 : i32
    %c0_i32_0 = arith.constant 0 : i32
    %c0_i32_1 = arith.constant 0 : i32
    return %arg0, %c0_i32, %arg1, %c0_i32_0 : i32, i32, i32, i32
  }
  func.func @transform_1(%arg0: i32, %arg1: i32) -> (i32, i32, i32, i32) {
    %c0_i32 = arith.constant 0 : i32
    %c0_i32_0 = arith.constant 0 : i32
    %c0_i32_1 = arith.constant 0 : i32
    return %arg0, %c0_i32, %arg1, %c0_i32_0 : i32, i32, i32, i32
  }
  func.func @transform_2(%arg0: i32, %arg1: i32) -> (i32, i32, i32, i32, i32) {
    %c0_i32 = arith.constant 0 : i32
    %c0_i32_0 = arith.constant 0 : i32
    %c0_i32_1 = arith.constant 0 : i32
    %c0_i32_2 = arith.constant 0 : i32
    %c0_i32_3 = arith.constant 0 : i32
    return %arg0, %c0_i32, %c0_i32_0, %c0_i32_1, %c0_i32_2 : i32, i32, i32, i32, i32
  }
}

</mosaic_0001>

<bundles_post_ra>
// kernel: dice_loss.1
= control target key start
LH: loop header
LB: loop body
LE: loop exit
PB: predicated region body
PF: predicated region fallthrough
CT: control target
= control target key end

     0   :  { %s533_s9 = smov 0   ;;  %s535_s10 = smov 0   ;;  %s591_s0 = inlined_call_operand.vmem [shape: f32[2,4,8,128], index: 0, kind: input, shape index: {}]   ;;  %s592_s1 = inlined_call_operand.vmem [shape: s32[2,1,8,128], index: 1, kind: input, shape index: {}]   ;;  %s593_s2 = inlined_call_operand.vmem [shape: f32[2,3,4,8,128], index: 2, kind: output, shape index: {}]  }
   0x1   :  { %s537_s11 = smov 0  }
   0x2 LB: > { %s24_s12 = sadd.s32 1, %s511_s10  ;;  %p420_p0 = scmp.ge.s32.totalorder %s515_s11, 1  ;;  %s515_s11 = sphi %s537_s11, %s12_s11   ;;  %s511_s10 = sphi %s535_s10, %s595_s10   ;;  %s507_s9 = sphi %s533_s9, %s594_s9  }
   0x3   : > { %p26_p1 = scmp.ge.s32.totalorder %s24_s12, 2  ;;  %p143_p2 = scmp.lt.s32.totalorder %s515_s11, 3 }
   0x5   : > { %s597_s12 = smov (%p26_p1, %s24_s12), 0  ;;  %p144_p3 = pnand %p420_p0, %p143_p2 }
   0x6   : > { %p175_p4 = scmp.lt.s32.totalorder (!%p144_p3), %s507_s9, 1 }
   0x7   : > { %147 = sbr.rel (%p144_p3) target bundleno = 75 (0x4b), region = 28 }
   0xc   : > { %s599_s9 = smov (!%p175_p4, %s507_s9), 1  ;;  %v517_v7 = vmov 0.0  }
   0xd   : > { %s457_s13 = smul.u32 96, %s599_s9  ;;  %s456_s14 = sshll.u32 %s599_s9, 5 }
   0xe   : > { %s182_s17 = scalar_lea.vmem %s591_s0, %s456_s14  ;;  %s423_s18 = sshll.u32 %s599_s9, 3 }
   0xf   : > { %s189_s21 = scalar_lea.vmem %s592_s1, %s423_s18  ;;  %v212_v0 = vld [vmem:[%s182_s17] sm:$0xff]  ;;  %v425_v1 = vld [vmem:[%s182_s17 + $0x8] sm:$0xff]  ;;  %v426_v2 = vld [vmem:[%s182_s17 + $0x10] sm:$0xff]  ;;  %s560_s24 = scalar_lea.vmem %s593_s2, %s457_s13 }
  0x10   : > { %v211_v3 = vld [vmem:[%s189_s21] sm:$0xff]  ;;  %v222_v4 = vmax.f32 %v212_v0, %v425_v1  ;;  %v427_v5 = vld [vmem:[%s182_s17 + $0x18] sm:$0xff] }
  0x11   : > { %vm250_vm0 = vcmp.eq.s32.totalorder %v211_v3, 0  ;;  %vm258_vm1 = vcmp.eq.s32.totalorder %v211_v3, 1  ;;  %vm266_vm2 = vcmp.eq.s32.totalorder %v211_v3, 2  ;;  %vm274_vm3 = vcmp.eq.s32.totalorder %v211_v3, 3 }
  0x12   : > { %v223_v6 = vmax.f32 %v222_v4, %v426_v2  ;;  %v428_v8 = vsel %vm250_vm0, 1.0, %v517_v7  ;;  %v429_v9 = vsel %vm258_vm1, 1.0, %v517_v7  ;;  %v430_v10 = vsel %vm266_vm2, 1.0, %v517_v7 }
  0x13   : > { %v431_v12 = vsel %vm274_vm3, 1.0, %v517_v7  ;;  %433 = vst [vmem:[%s560_s24 + $0x20] sm:$0xff] %v428_v8  ;;  %439 = vst [vmem:[%s560_s24 + $0x28] sm:$0xff] %v429_v9  ;;  %vm244_vm4 = vcmp.ge.s32.totalorder %v211_v3, 0 }
  0x14   : > { %v224_v11 = vmax.f32 %v223_v6, %v427_v5  ;;  %445 = vst [vmem:[%s560_s24 + $0x30] sm:$0xff] %v430_v10  ;;  %451 = vst [vmem:[%s560_s24 + $0x38] sm:$0xff] %v431_v12 }
  0x16   : > { %v225_v13 = vsub.f32 %v212_v0, %v224_v11  ;;  %v228_v14 = vsub.f32 %v425_v1, %v224_v11  ;;  %v231_v15 = vsub.f32 %v426_v2, %v224_v11  ;;  %v234_v16 = vsub.f32 %v427_v5, %v224_v11 }
  0x18   : > { %v226_v17 = vmul.f32 1.442695, %v225_v13  ;;  %v229_v18 = vmul.f32 1.442695, %v228_v14  ;;  %v232_v19 = vmul.f32 1.442695, %v231_v15 }
  0x19   : > { %v235_v20 = vmul.f32 1.442695, %v234_v16 }
  0x1a   : > { %483 = vpow2.f32 %v226_v17 }
  0x1b   : > { %485 = vpow2.f32 %v229_v18 }
  0x1c   : > { %487 = vpow2.f32 %v232_v19 }
  0x1d   : > { %489 = vpow2.f32 %v235_v20 }
  0x27   : > { %v484_v21 = vpop.eup %483 }
  0x28   : > { %v486_v22 = vpop.eup %485 }
  0x29   : > { %v488_v23 = vpop.eup %487  ;;  %v237_v24 = vadd.f32 %v486_v22, %v484_v21 }
  0x2a   : > { %v490_v25 = vpop.eup %489 }
  0x2b   : > { %v238_v26 = vadd.f32 %v488_v23, %v237_v24 }
  0x2d   : > { %v239_v27 = vadd.f32 %v490_v25, %v238_v26 }
  0x2f   : > { %491 = vrcp.f32 %v239_v27 }
  0x3c   : > { %v492_v28 = vpop.eup %491 }
  0x3d   : > { %v241_v29 = vmul.f32 %v492_v28, %v239_v27 }
  0x3f   : > { %v242_v30 = vsub.f32 2.0, %v241_v29 }
  0x41   : > { %v243_v31 = vmul.f32 %v492_v28, %v242_v30 }
  0x43   : > { %v245_v32 = vsel %vm244_vm4, %v243_v31, 0.0 }
  0x44   : > { %v246_v33 = vmul.f32 %v484_v21, %v245_v32  ;;  %v247_v34 = vmul.f32 %v486_v22, %v245_v32  ;;  %v248_v35 = vmul.f32 %v488_v23, %v245_v32  ;;  %v249_v36 = vmul.f32 %v490_v25, %v245_v32 }
  0x46   : > { %v251_v37 = vsel %vm250_vm0, %v246_v33, 0.0  ;;  %v256_v38 = vmul.f32 %v246_v33, %v246_v33  ;;  %v259_v39 = vsel %vm258_vm1, %v247_v34, 0.0  ;;  %v264_v40 = vmul.f32 %v247_v34, %v247_v34 }
  0x47   : > { %v267_v41 = vsel %vm266_vm2, %v248_v35, 0.0  ;;  %v272_v42 = vmul.f32 %v248_v35, %v248_v35  ;;  %v275_v43 = vsel %vm274_vm3, %v249_v36, 0.0  ;;  %284 = vst [vmem:[%s560_s24] sm:$0xff] %v251_v37  ;;  %437 = vst [vmem:[%s560_s24 + $0x8] sm:$0xff] %v259_v39  ;;  %v280_v44 = vmul.f32 %v249_v36, %v249_v36 }
  0x48   : > { %435 = vst [vmem:[%s560_s24 + $0x40] sm:$0xff] %v256_v38  ;;  %441 = vst [vmem:[%s560_s24 + $0x48] sm:$0xff] %v264_v40 }
  0x49   : > { %443 = vst [vmem:[%s560_s24 + $0x10] sm:$0xff] %v267_v41  ;;  %447 = vst [vmem:[%s560_s24 + $0x50] sm:$0xff] %v272_v42 }
  0x4a   : > { %449 = vst [vmem:[%s560_s24 + $0x18] sm:$0xff] %v275_v43  ;;  %453 = vst [vmem:[%s560_s24 + $0x58] sm:$0xff] %v280_v44 }
  0x4b PF: > { %s12_s11 = sadd.s32 1, %s515_s11   ;;  %s594_s9 = smov %s511_s10 }
  0x4c   : > { %p9_p5 = scmp.ge.s32.totalorder %s12_s11, 4   ;;  %s595_s10 = smov %s597_s12 }
  0x4e   :  { %11 = sbr.rel (!%p9_p5) target bundleno = 2 (0x2), region = 79 }

</bundles_post_ra>
